<compile_context>
chip_gen: v7x
topology: tpu7x:2x2x1
jax: 0.10.0
libtpu: 0.0.40
codegen_flags: <defaults>
</compile_context>

<pallas_src>
import math

import jax
import jax.numpy as jnp
from jax import lax
from jax.experimental import pallas as pl
from jax.experimental.pallas import tpu as pltpu


_LANE = 128                       # TPU lane width (last-dim vreg tiling)
_TARGET_ROW_BLOCK = 512           # sweep 256-1024; ~85% of HBM roofline per tile data
_FUSED_GATHER_MAX_TABLE_BYTES = 2 * 1024 * 1024
_FUSED_GATHER_MAX_LABELS = 1024   # bounds the one-hot tile width (rows x labels)


def _cdiv(a, b):
    return -(-a // b)


def _round_up(x, m):
    return _cdiv(x, m) * m


def _padded_bytes(shape, itemsize):
    """Approximate bytes of a VMEM buffer after (8, 128) tile padding."""
    if len(shape) == 0:
        r, c = 1, 1
    elif len(shape) == 1:
        r, c = 1, shape[0]
    else:
        r, c = math.prod(shape[:-1]), shape[-1]
    return _round_up(max(r, 1), 8) * _round_up(max(c, 1), _LANE) * itemsize


# ----------------------------------------------------------------------------
# Fused kernel: [one-hot embedding gather] + LayerNorm + [Linear->ReLU]* + Linear
# for one tile of rows. All intermediates stay in VMEM / vregs; one HBM write.
# ----------------------------------------------------------------------------
def _make_kernel(n_hidden, ln_eps, enable_layer_norm, fuse_gather, transpose_out,
                 matmul_dtype):
    def kernel(*refs):
        if fuse_gather:
            ids_ref, emb_ref = refs[0], refs[1]
            i = 2
        else:
            x_ref = refs[0]
            i = 1
        ln_g_ref, ln_b_ref = refs[i], refs[i + 1]
        hidden_refs = refs[i + 2:i + 2 + 2 * n_hidden]
        wo_ref, bo_ref = refs[i + 2 + 2 * n_hidden], refs[i + 3 + 2 * n_hidden]
        out_ref = refs[i + 4 + 2 * n_hidden]

        if fuse_gather:
            idx = ids_ref[...]                                     # (R, 1) int32
            rows, labels = idx.shape[0], emb_ref.shape[0]
            onehot = (idx == lax.broadcasted_iota(jnp.int32, (rows, labels), 1)
                      ).astype(jnp.float32)
            # exact row gather expressed as an (otherwise idle) MXU matmul, f32
            x = jnp.dot(onehot, emb_ref[...], preferred_element_type=jnp.float32)
        else:
            x = x_ref[...].astype(jnp.float32)                     # (R, E)

        if enable_layer_norm:                                      # f32 VPU/EUP math
            mean = jnp.mean(x, axis=-1, keepdims=True)
            xc = x - mean
            var = jnp.mean(xc * xc, axis=-1, keepdims=True)
            x = xc * lax.rsqrt(var + ln_eps)
            x = x * ln_g_ref[...] + ln_b_ref[...]

        h = x
        for k in range(n_hidden):                                  # static unroll
            w = hidden_refs[2 * k][...]                            # (in, out) matmul_dtype
            b = hidden_refs[2 * k + 1][...]                        # (1, out)  f32
            acc = jnp.dot(h.astype(matmul_dtype), w,
                          preferred_element_type=jnp.float32)
            h = jnp.maximum(acc + b, 0.0)

        hm = h.astype(matmul_dtype)
        if transpose_out:
            # out_t[o, r] = sum_h w_out_t[o, h] * hm[r, h] -> lane-dense (O, R) block
            out = lax.dot_general(wo_ref[...], hm,
                                  dimension_numbers=(((1,), (1,)), ((), ())),
                                  preferred_element_type=jnp.float32)
            out = out + bo_ref[...]                                # (O, 1) broadcast
        else:
            out = jnp.dot(hm, wo_ref[...],
                          preferred_element_type=jnp.float32) + bo_ref[...]
        out_ref[...] = out.astype(out_ref.dtype)                   # unmasked vst stores
    return kernel


# ----------------------------------------------------------------------------
# Wrapper: id padding, (optional) XLA gather fallback, pallas_call, un-transpose
# ----------------------------------------------------------------------------
def label_encoder_forward(params, ids, *, ln_eps=1e-5, enable_layer_norm=True,
                          matmul_dtype=jnp.bfloat16, fuse_embedding_gather=None):
    """ids: int array of label indices with arbitrary leading shape."""
    emb_tbl = params['emb']                          # (num_labels, E) f32
    ln_g, ln_b = params['ln_g'], params['ln_b']      # (1, E) f32
    hidden = params['hidden']                        # list of (W (in,out), b (1,out))
    w_out, b_out = params['w_out'], params['b_out']  # (H, O), (1, O)

    num_labels, E = emb_tbl.shape
    O = w_out.shape[1]
    lead_shape = ids.shape
    n = math.prod(lead_shape) if lead_shape else 1

    ids_flat = jnp.reshape(ids, (-1,)).astype(jnp.int32)

    # Row tiling: multiple of 128 lanes, target 512, and >= 2 grid blocks so both
    # v7x TensorCores get work (the extra padded tile is negligible at these sizes).
    rb = min(_TARGET_ROW_BLOCK, max(_LANE, _LANE * _cdiv(n, 2 * _LANE)))
    n_blocks = max(2, _cdiv(n, rb))
    n_pad = n_blocks * rb
    if n_pad != n:
        # pad the cheap int32 ids, never the (N, E) activations
        ids_flat = jnp.pad(ids_flat, (0, n_pad - n))

    if fuse_embedding_gather is None:
        fuse_embedding_gather = (
            num_labels * E * emb_tbl.dtype.itemsize <= _FUSED_GATHER_MAX_TABLE_BYTES
            and num_labels <= _FUSED_GATHER_MAX_LABELS)
    transpose_out = O < _LANE                        # lane-dense store for narrow outputs

    # matmul operands in bf16 (f32 accumulation); LN params / biases stay f32
    hidden_w = [w.astype(matmul_dtype) for (w, _) in hidden]
    hidden_b = [b.astype(jnp.float32) for (_, b) in hidden]
    if transpose_out:
        wo = jnp.transpose(w_out).astype(matmul_dtype)           # (O, H)
        bo = jnp.reshape(b_out, (O, 1)).astype(jnp.float32)      # (O, 1)
    else:
        wo = w_out.astype(matmul_dtype)
        bo = b_out.astype(jnp.float32)

    def resident(a):
        # Full-shape block, constant index map -> fetched once, VMEM resident.
        return pl.BlockSpec(a.shape, lambda i: (0,) * a.ndim)

    in_specs, args = [], []
    if fuse_embedding_gather:
        in_specs += [pl.BlockSpec((rb, 1), lambda i: (i, 0)), resident(emb_tbl)]
        args += [jnp.reshape(ids_flat, (n_pad, 1)), emb_tbl]
    else:
        # Huge label space: XLA performs the row gather; id padding fuses into it.
        x = emb_tbl[ids_flat]                                    # (n_pad, E)
        in_specs += [pl.BlockSpec((rb, E), lambda i: (i, 0))]
        args += [x]
    in_specs += [resident(ln_g), resident(ln_b)]
    args += [ln_g, ln_b]
    for w, b in zip(hidden_w, hidden_b):
        in_specs += [resident(w), resident(b)]
        args += [w, b]
    in_specs += [resident(wo), resident(bo)]
    args += [wo, bo]

    if transpose_out:
        out_shape = jax.ShapeDtypeStruct((O, n_pad), jnp.float32)
        out_spec = pl.BlockSpec((O, rb), lambda i: (0, i))
    else:
        out_shape = jax.ShapeDtypeStruct((n_pad, O), jnp.float32)
        out_spec = pl.BlockSpec((rb, O), lambda i: (i, 0))

    # Explicit VMEM budget: 2x pipelined tiles + 2x resident params + temporaries,
    # capped against the current generation's physical VMEM.
    pipelined = _padded_bytes((rb, 1) if fuse_embedding_gather else (rb, E), 4)
    pipelined += _padded_bytes((O, rb) if transpose_out else (rb, O), 4)
    resident_b = sum(_padded_bytes(tuple(a.shape), a.dtype.itemsize) for a in args[1:])
    widths = [E, O] + [int(w.shape[1]) for w in hidden_w]
    if fuse_embedding_gather:
        widths.append(num_labels)
    temps = 4 * rb * max(widths) * 4
    est = 2 * (pipelined + resident_b) + temps
    try:
        phys_vmem = pltpu.get_tpu_info().vmem_capacity_bytes
    except Exception:
        phys_vmem = 64 * 1024 * 1024                  # v7x per-TC physical (smallest)
    vmem_limit = int(min(3 * phys_vmem // 4, max(32 * 1024 * 1024, 2 * est)))

    kernel = _make_kernel(len(hidden), ln_eps, enable_layer_norm,
                          fuse_embedding_gather, transpose_out, matmul_dtype)

    out = pl.pallas_call(
        kernel,
        out_shape=out_shape,
        grid_spec=pltpu.PrefetchScalarGridSpec(
            num_scalar_prefetch=0,
            grid=(n_blocks,),
            in_specs=in_specs,
            out_specs=out_spec,
        ),
        compiler_params=pltpu.CompilerParams(
            dimension_semantics=("parallel",),
            vmem_limit_bytes=vmem_limit),
    )(*args)

    if transpose_out:
        out = jnp.transpose(out[:, :n])               # (n, O); XLA-side layout plumbing
    else:
        out = out[:n]
    out = out.reshape(lead_shape + (O,))
    if O == 1:                                        # torch.squeeze(-1)
        out = out[..., 0]
    return out


# ----------------------------------------------------------------------------
# Pure-JAX reference (mirrors the PyTorch math; optional bf16 matmul policy)
# ----------------------------------------------------------------------------
def reference_forward(p, ids, *, ln_eps=1e-5, enable_layer_norm=True,
                      matmul_dtype=jnp.float32):
    x = p['emb'][ids]
    if enable_layer_norm:
        mean = jnp.mean(x, axis=-1, keepdims=True)
        xc = x - mean
        var = jnp.mean(xc * xc, axis=-1, keepdims=True)
        x = xc * lax.rsqrt(var + ln_eps) * p['ln_g'][0] + p['ln_b'][0]
    for w, b in p['hidden']:
        x = jax.nn.relu(jnp.dot(x.astype(matmul_dtype), w.astype(matmul_dtype),
                                preferred_element_type=jnp.float32) + b[0])
    out = jnp.dot(x.astype(matmul_dtype), p['w_out'].astype(matmul_dtype),
                  preferred_element_type=jnp.float32) + p['b_out'][0]
    if p['w_out'].shape[1] == 1:
        out = out[..., 0]
    return out


if __name__ == "__main__":
    # Small shapes consistent with the module:
    #   num_labels=64, emb_size=32, linear_size=[64], output_size=32,
    #   batch of label ids: (B, S) = (2, 8)
    num_labels, E = 64, 32
    hidden_size, output_size = 64, 32
    B, S = 2, 8

    key = jax.random.PRNGKey(0)
    ks = jax.random.split(key, 8)

    def init(k, shape, scale=0.1):
        return (scale * jax.random.normal(k, shape)).astype(jnp.float32)

    params = dict(
        emb=init(ks[0], (num_labels, E), scale=1.0),
        ln_g=(jnp.ones((1, E), jnp.float32) + init(ks[1], (1, E))),
        ln_b=init(ks[2], (1, E)),
        hidden=[(init(ks[3], (E, hidden_size)), init(ks[4], (1, hidden_size)))],
        w_out=init(ks[5], (hidden_size, output_size)),
        b_out=init(ks[6], (1, output_size)),
    )
    ids = jax.random.randint(ks[7], (B, S), 0, num_labels).astype(jnp.int32)

    # Fused in-kernel gather path (small label table) ...
    out = jax.block_until_ready(label_encoder_forward(params, ids))
    # ... and the XLA-gather fallback path (huge label tables); same kernel body.
    out_fallback = jax.block_until_ready(
        label_encoder_forward(params, ids, fuse_embedding_gather=False))

    ref_bf16 = jax.block_until_ready(
        reference_forward(params, ids, matmul_dtype=jnp.bfloat16))
    ref_f32 = jax.block_until_ready(
        reference_forward(params, ids, matmul_dtype=jnp.float32))

    assert out.shape == (B, S, output_size), out.shape
    assert out_fallback.shape == (B, S, output_size), out_fallback.shape
    # Matches a reference using the same bf16-operand / f32-accumulate policy ...
    assert float(jnp.max(jnp.abs(out - ref_bf16))) < 5e-3
    assert float(jnp.max(jnp.abs(out_fallback - ref_bf16))) < 5e-3
    # ... and the full-f32 PyTorch-default math within bf16 rounding.
    assert float(jnp.max(jnp.abs(out - ref_f32))) < 5e-2
    print("KERNEL_OK")
</pallas_src>

<mosaic_0001>
module attributes {stable_mosaic.version = 11 : i64} {
  func.func @kernel(%arg0: i32, %arg1: memref<128x1xi32, #tpu.memory_space<vmem>>, %arg2: memref<64x32xf32, #tpu.memory_space<vmem>>, %arg3: memref<1x32xf32, #tpu.memory_space<vmem>>, %arg4: memref<1x32xf32, #tpu.memory_space<vmem>>, %arg5: memref<32x64xbf16, #tpu.memory_space<vmem>>, %arg6: memref<1x64xf32, #tpu.memory_space<vmem>>, %arg7: memref<32x64xbf16, #tpu.memory_space<vmem>>, %arg8: memref<32x1xf32, #tpu.memory_space<vmem>>, %arg9: memref<32x128xf32, #tpu.memory_space<vmem>>) attributes {dimension_semantics = [#tpu.dimension_semantics<parallel>], iteration_bounds = array<i64: 2>, scalar_prefetch = 0 : i64, scratch_operands = 0 : i64, tpu.core_type = #tpu.core_type<tc>, window_params = [{transform_indices = @transform_0, window_bounds = array<i64: 128, 1>}, {pipeline_mode = #tpu.pipeline_mode<synchronous>, transform_indices = @transform_1, window_bounds = array<i64: 64, 32>}, {pipeline_mode = #tpu.pipeline_mode<synchronous>, transform_indices = @transform_2, window_bounds = array<i64: 1, 32>}, {pipeline_mode = #tpu.pipeline_mode<synchronous>, transform_indices = @transform_3, window_bounds = array<i64: 1, 32>}, {pipeline_mode = #tpu.pipeline_mode<synchronous>, transform_indices = @transform_4, window_bounds = array<i64: 32, 64>}, {pipeline_mode = #tpu.pipeline_mode<synchronous>, transform_indices = @transform_5, window_bounds = array<i64: 1, 64>}, {pipeline_mode = #tpu.pipeline_mode<synchronous>, transform_indices = @transform_6, window_bounds = array<i64: 32, 64>}, {pipeline_mode = #tpu.pipeline_mode<synchronous>, transform_indices = @transform_7, window_bounds = array<i64: 32, 1>}, {transform_indices = @transform_8, window_bounds = array<i64: 32, 128>}]} {
    %c0 = arith.constant 0 : index
    %c0_0 = arith.constant 0 : index
    %0 = vector.load %arg1[%c0, %c0_0] : memref<128x1xi32, #tpu.memory_space<vmem>>, vector<128x1xi32>
    %1 = tpu.iota {dimensions = array<i32: 1>} : vector<128x64xi32>
    %2 = vector.broadcast %0 : vector<128x1xi32> to vector<128x64xi32>
    %3 = arith.cmpi eq, %2, %1 : vector<128x64xi32>
    %4 = arith.extui %3 : vector<128x64xi1> to vector<128x64xi32>
    %5 = arith.sitofp %4 : vector<128x64xi32> to vector<128x64xf32>
    %c0_1 = arith.constant 0 : index
    %c0_2 = arith.constant 0 : index
    %6 = vector.load %arg2[%c0_1, %c0_2] : memref<64x32xf32, #tpu.memory_space<vmem>>, vector<64x32xf32>
    %cst = arith.constant dense<0.000000e+00> : vector<128x32xf32>
    %7 = tpu.matmul %5, %6, %cst {dimension_numbers = #tpu.dot_dimension_numbers<[1], [0], [0], [1], [0, 0, 1, 1], [], []>} : vector<128x64xf32>, vector<64x32xf32>, vector<128x32xf32> -> vector<128x32xf32>
    %cst_3 = arith.constant dense<0.000000e+00> : vector<128xf32>
    %8 = vector.multi_reduction <add>, %7, %cst_3 [1] : vector<128x32xf32> to vector<128xf32>
    %9 = vector.shape_cast %8 : vector<128xf32> to vector<128x1xf32>
    %cst_4 = arith.constant 3.200000e+01 : f32
    %10 = vector.broadcast %cst_4 : f32 to vector<128x1xf32>
    %11 = arith.divf %9, %10 : vector<128x1xf32>
    %12 = vector.broadcast %11 : vector<128x1xf32> to vector<128x32xf32>
    %13 = arith.subf %7, %12 : vector<128x32xf32>
    %14 = arith.mulf %13, %13 : vector<128x32xf32>
    %cst_5 = arith.constant dense<0.000000e+00> : vector<128xf32>
    %15 = vector.multi_reduction <add>, %14, %cst_5 [1] : vector<128x32xf32> to vector<128xf32>
    %16 = vector.shape_cast %15 : vector<128xf32> to vector<128x1xf32>
    %cst_6 = arith.constant 3.200000e+01 : f32
    %17 = vector.broadcast %cst_6 : f32 to vector<128x1xf32>
    %18 = arith.divf %16, %17 : vector<128x1xf32>
    %cst_7 = arith.constant 9.99999974E-6 : f32
    %19 = vector.broadcast %cst_7 : f32 to vector<128x1xf32>
    %20 = arith.addf %18, %19 : vector<128x1xf32>
    %21 = math.rsqrt %20 : vector<128x1xf32>
    %22 = vector.broadcast %21 : vector<128x1xf32> to vector<128x32xf32>
    %23 = arith.mulf %13, %22 : vector<128x32xf32>
    %c0_8 = arith.constant 0 : index
    %c0_9 = arith.constant 0 : index
    %24 = vector.load %arg3[%c0_8, %c0_9] : memref<1x32xf32, #tpu.memory_space<vmem>>, vector<1x32xf32>
    %25 = vector.broadcast %24 : vector<1x32xf32> to vector<128x32xf32>
    %26 = arith.mulf %23, %25 : vector<128x32xf32>
    %c0_10 = arith.constant 0 : index
    %c0_11 = arith.constant 0 : index
    %27 = vector.load %arg4[%c0_10, %c0_11] : memref<1x32xf32, #tpu.memory_space<vmem>>, vector<1x32xf32>
    %28 = vector.broadcast %27 : vector<1x32xf32> to vector<128x32xf32>
    %29 = arith.addf %26, %28 : vector<128x32xf32>
    %c0_12 = arith.constant 0 : index
    %c0_13 = arith.constant 0 : index
    %30 = vector.load %arg5[%c0_12, %c0_13] : memref<32x64xbf16, #tpu.memory_space<vmem>>, vector<32x64xbf16>
    %c0_14 = arith.constant 0 : index
    %c0_15 = arith.constant 0 : index
    %31 = vector.load %arg6[%c0_14, %c0_15] : memref<1x64xf32, #tpu.memory_space<vmem>>, vector<1x64xf32>
    %32 = arith.truncf %29 : vector<128x32xf32> to vector<128x32xbf16>
    %cst_16 = arith.constant dense<0.000000e+00> : vector<128x64xf32>
    %33 = tpu.matmul %32, %30, %cst_16 {dimension_numbers = #tpu.dot_dimension_numbers<[1], [0], [0], [1], [0, 0, 1, 1], [], []>} : vector<128x32xbf16>, vector<32x64xbf16>, vector<128x64xf32> -> vector<128x64xf32>
    %34 = vector.broadcast %31 : vector<1x64xf32> to vector<128x64xf32>
    %35 = arith.addf %33, %34 : vector<128x64xf32>
    %cst_17 = arith.constant 0.000000e+00 : f32
    %36 = vector.broadcast %cst_17 : f32 to vector<128x64xf32>
    %37 = arith.maximumf %35, %36 : vector<128x64xf32>
    %38 = arith.truncf %37 : vector<128x64xf32> to vector<128x64xbf16>
    %c0_18 = arith.constant 0 : index
    %c0_19 = arith.constant 0 : index
    %39 = vector.load %arg7[%c0_18, %c0_19] : memref<32x64xbf16, #tpu.memory_space<vmem>>, vector<32x64xbf16>
    %cst_20 = arith.constant dense<0.000000e+00> : vector<32x128xf32>
    %40 = tpu.matmul %39, %38, %cst_20 {dimension_numbers = #tpu.dot_dimension_numbers<[1], [1], [0], [0], [0, 0, 1, 0], [], []>} : vector<32x64xbf16>, vector<128x64xbf16>, vector<32x128xf32> -> vector<32x128xf32>
    %c0_21 = arith.constant 0 : index
    %c0_22 = arith.constant 0 : index
    %41 = vector.load %arg8[%c0_21, %c0_22] : memref<32x1xf32, #tpu.memory_space<vmem>>, vector<32x1xf32>
    %42 = vector.broadcast %41 : vector<32x1xf32> to vector<32x128xf32>
    %43 = arith.addf %40, %42 : vector<32x128xf32>
    %c0_23 = arith.constant 0 : index
    %c0_24 = arith.constant 0 : index
    %44 = vector.load %arg9[%c0_23, %c0_24] : memref<32x128xf32, #tpu.memory_space<vmem>>, vector<32x128xf32>
    tpu.vector_store %arg9[%c0_23, %c0_24], %43 {strides = array<i32>} : memref<32x128xf32, #tpu.memory_space<vmem>>, vector<32x128xf32>,
    return
  }
  func.func @transform_0(%arg0: i32) -> (i32, i32) {
    %c0_i32 = arith.constant 0 : i32
    %c0_i32_0 = arith.constant 0 : i32
    return %arg0, %c0_i32 : i32, i32
  }
  func.func @transform_1(%arg0: i32) -> (i32, i32) {
    %c0_i32 = arith.constant 0 : i32
    %c0_i32_0 = arith.constant 0 : i32
    %c0_i32_1 = arith.constant 0 : i32
    return %c0_i32, %c0_i32_0 : i32, i32
  }
  func.func @transform_2(%arg0: i32) -> (i32, i32) {
    %c0_i32 = arith.constant 0 : i32
    %c0_i32_0 = arith.constant 0 : i32
    %c0_i32_1 = arith.constant 0 : i32
    return %c0_i32, %c0_i32_0 : i32, i32
  }
  func.func @transform_3(%arg0: i32) -> (i32, i32) {
    %c0_i32 = arith.constant 0 : i32
    %c0_i32_0 = arith.constant 0 : i32
    %c0_i32_1 = arith.constant 0 : i32
    return %c0_i32, %c0_i32_0 : i32, i32
  }
  func.func @transform_4(%arg0: i32) -> (i32, i32) {
    %c0_i32 = arith.constant 0 : i32
    %c0_i32_0 = arith.constant 0 : i32
    %c0_i32_1 = arith.constant 0 : i32
    return %c0_i32, %c0_i32_0 : i32, i32
  }
  func.func @transform_5(%arg0: i32) -> (i32, i32) {
    %c0_i32 = arith.constant 0 : i32
    %c0_i32_0 = arith.constant 0 : i32
    %c0_i32_1 = arith.constant 0 : i32
    return %c0_i32, %c0_i32_0 : i32, i32
  }
  func.func @transform_6(%arg0: i32) -> (i32, i32) {
    %c0_i32 = arith.constant 0 : i32
    %c0_i32_0 = arith.constant 0 : i32
    %c0_i32_1 = arith.constant 0 : i32
    return %c0_i32, %c0_i32_0 : i32, i32
  }
  func.func @transform_7(%arg0: i32) -> (i32, i32) {
    %c0_i32 = arith.constant 0 : i32
    %c0_i32_0 = arith.constant 0 : i32
    %c0_i32_1 = arith.constant 0 : i32
    return %c0_i32, %c0_i32_0 : i32, i32
  }
  func.func @transform_8(%arg0: i32) -> (i32, i32) {
    %c0_i32 = arith.constant 0 : i32
    %c0_i32_0 = arith.constant 0 : i32
    return %c0_i32, %arg0 : i32, i32
  }
}

</mosaic_0001>

<bundles_post_ra>
// kernel: tpu_custom_call.1
= control target key start
LH: loop header
LB: loop body
LE: loop exit
PB: predicated region body
PF: predicated region fallthrough
CT: control target
= control target key end

     0   :  { %13 = vsyncpa [#allocation3], 0  ;;  %s2085_s0 = inlined_call_operand.vmem [shape: s32[256,1], index: 0, kind: input, shape index: {}]   ;;  %s2086_s1 = inlined_call_operand.vmem [shape: f32[64,32], index: 1, kind: input, shape index: {}]   ;;  %s2087_s2 = inlined_call_operand.vmem [shape: f32[1,32], index: 2, kind: input, shape index: {}]   ;;  %s2088_s3 = inlined_call_operand.vmem [shape: f32[1,32], index: 3, kind: input, shape index: {}]   ;;  %s2089_s4 = inlined_call_operand.vmem [shape: bf16[32,64], index: 4, kind: input, shape index: {}]   ;;  %s2090_s5 = inlined_call_operand.vmem [shape: f32[1,64], index: 5, kind: input, shape index: {}]   ;;  %s2091_s6 = inlined_call_operand.vmem [shape: bf16[32,64], index: 6, kind: input, shape index: {}]   ;;  %s2092_s7 = inlined_call_operand.vmem [shape: f32[32,1], index: 7, kind: input, shape index: {}]   ;;  %s2093_s8 = inlined_call_operand.hbm [shape: f32[32,256], index: 8, kind: output, shape index: {}]  }
   0x1   :  { %15 = vsyncpa [#allocation3 + $0x1], 0  ;;  %s1656_s27 = smov 0   ;;  %s1658_s28 = smov 0  }
   0x2   :  { %s1660_s29 = smov 0   ;;  %s1662_s30 = smov 0  }
   0x3 LB: > { %s1677_s9 = sadd.s32 4294967295, %s1603_s30   ;;  %s1251_s10 = sadd.s32 4294967294, %s1603_s30   ;;  %s1603_s30 = sphi %s1662_s30, %s2099_s30   ;;  %s1599_s29 = sphi %s1660_s29, %s2098_s29   ;;  %s1595_s28 = sphi %s1658_s28, %s2097_s28   ;;  %s1591_s27 = sphi %s1656_s27, %s2096_s27  }
   0x4   : > { %s1681_s11 = sadd.s32 1, %s1603_s30   ;;  %s201_s12 = sadd.s32 1, %s1599_s29 }
   0x5   : > { %s198_s13 = ssub.s32 %s1603_s30, %s1681_s11  ;;  %p211_p0 = scmp.ne.s32.totalorder %s1599_s29, %s1595_s28 }
   0x6   : > { %p199_p1 = scmp.eq.s32.totalorder %s198_s13, 0  ;;  %p212_p2 = scmp.eq.s32.totalorder %s1677_s9, 1 }
   0x7   : > { %p217_p3 = scmp.ne.s32.totalorder %s1595_s28, %s1591_s27  ;;  %p218_p4 = scmp.eq.s32.totalorder %s1251_s10, 1 }
   0x8   : > { %s1692_s14 = scalar_select %p199_p1, %s1599_s29, %s201_s12  }
   0x9   : > { %p1694_p5 = por %p212_p2, %p211_p0  ;;  %p1698_p6 = por %p218_p4, %p217_p3 }
   0xa   : > { %p1254_p7 = scmp.ge.s32.totalorder %s1603_s30, 1  ;;  %p266_p8 = scmp.lt.s32.totalorder %s1603_s30, 3 }
   0xc   : > { %p267_p9 = pnand %p1254_p7, %p266_p8 }
   0xd   : > { %s1256_s17 = sshll.u32 (!%p267_p9), %s1677_s9, 4  ;;  %v421_v0 = vld [vmem:[%s2086_s1] sm:$0xff] (!%p267_p9)  ;;  %v422_v1 = vld [vmem:[%s2086_s1 + $0x8] sm:$0xff] (!%p267_p9)  ;;  %v423_v2 = vld [vmem:[%s2086_s1 + $0x10] sm:$0xff] (!%p267_p9)  ;;  %v1605_v3 = vmov (!%p267_p9), 0   ;;  %v323_v29 = vlaneseq (!%p267_p9)  ;;  %vm429_vm0 = vcmask (!%p267_p9), 523264  }
   0xe   : > { %270 = sbr.rel (%p267_p9) target bundleno = 1214 (0x4be), region = 52  ;;  %1504 = vset.pattern.permute.xlu1 (!%p267_p9), %v1605_v3  ;;  %1503 = vset.pattern.permute.xlu0 (!%p267_p9), %v1605_v3  ;;  %p301_p10 = scmp.lt.s32.totalorder (!%p267_p9), %s1256_s17, 31  ;;  %v1435_v4 = vpack.c.bf16 (!%p267_p9), %v422_v1, %v421_v0  ;;  %v424_v5 = vld [vmem:[%s2086_s1 + $0x18] sm:$0xff] (!%p267_p9)  ;;  %v425_v7 = vld [vmem:[%s2086_s1 + $0x20] sm:$0xff] (!%p267_p9)  ;;  %v426_v8 = vld [vmem:[%s2086_s1 + $0x28] sm:$0xff] (!%p267_p9)  ;;  %v1606_v33 = vmov (!%p267_p9), 0.0  }
   0xf   : > { %v1439_v6 = vpack.c.bf16 (!%p267_p9), %v424_v5, %v423_v2  ;;  %v1443_v9 = vpack.c.bf16 (!%p267_p9), %v426_v8, %v425_v7  ;;  %v427_v14 = vld [vmem:[%s2086_s1 + $0x30] sm:$0xff] (!%p267_p9)  ;;  %v428_v15 = vld [vmem:[%s2086_s1 + $0x38] sm:$0xff] (!%p267_p9)  ;;  %v1750_v30 = vand.u32 (!%p267_p9), 127, %v323_v29  ;;  %s1308_s25 = sshll.u32 (!%p267_p9), %s1677_s9, 7 }
  0x10   : > { %1436 = vmatprep.subr.bf16.mxu0 (!%p267_p9), %v1435_v4  ;;  %v1447_v18 = vpack.c.bf16 (!%p267_p9), %v428_v15, %v427_v14  ;;  %s2042_s12 = scalar_lea.hbm (!%p267_p9), %s2093_s8, %s1308_s25 }
  0x11   : > { %1438 = vmatpush3.bf16.msra.mxu0 (!%p267_p9), %v1435_v4 }
  0x12   : > { %1440 = vmatprep.subr.bf16.mxu0 (!%p267_p9), %v1439_v6 }
  0x15   : > { %s2101_s17 = smov (!%p301_p10, %s1256_s17), 31  ;;  %1442 = vmatpush3.bf16.msra.mxu0 %v1439_v6 }
  0x16   : > { %s1257_s18 = sshll.u32 %s2101_s17, 3  ;;  %1444 = vmatprep.subr.bf16.mxu0 %v1443_v9  ;;  %s297_s17 = sand.u32 1, %s1595_s28  }
  0x17   : > { %s1726_s21 = scalar_lea.vmem %s2085_s0, %s1257_s18  ;;  %s1255_s22 = sshll.u32 %s297_s17, 5 }
  0x18   : > { %v309_v10 = vld [vmem:[%s1726_s21 + $0x10] sm:$0xff]  ;;  %v307_v11 = vld [vmem:[%s1726_s21] sm:$0xff]  ;;  %v310_v12 = vld [vmem:[%s1726_s21 + $0x18] sm:$0xff]  ;;  %s299_s23 = scalar_lea.vmem [#allocation2], %s1255_s22  ;;  %s2044_s9 = scalar_lea.sflag [#allocation3], %s297_s17 }
  0x19   : > { %332 = vperm.xlu1 %1504, %v309_v10   ;;  %326 = vperm.xlu0 %1503, %v307_v11   ;;  %v308_v13 = vld [vmem:[%s1726_s21 + $0x8] sm:$0xff]  ;;  %v311_v17 = vld [vmem:[%s1726_s21 + $0x20] sm:$0xff]  ;;  %v314_v19 = vld [vmem:[%s1726_s21 + $0x38] sm:$0xff]  ;;  %s1189_s24 = sshll.u32 %s299_s23, 4  ;;  %s1607_s18 = smov [#allocation2]   ;;  %s2037_s24 = int_to_ptr.vmem [resolvable:$true] %s1189_s24 }
  0x1a   : > { %v312_v16 = vld [vmem:[%s1726_s21 + $0x28] sm:$0xff]  ;;  %1446 = vmatpush3.bf16.msra.mxu0 %v1443_v9  ;;  %v313_v20 = vld [vmem:[%s1726_s21 + $0x30] sm:$0xff]  ;;  %v315_v22 = vld [vmem:[%s1726_s21 + $0x40] sm:$0xff]  ;;  %s1541_s13 = scalar_lea.vmem %s2037_s24, 512  ;;  %s1545_s19 = sshll.u32 %s1607_s18, 4  ;;  %s1546_s19 = int_to_ptr.vmem [resolvable:$false] %s1545_s19 }
  0x1b   : > { %1448 = vmatprep.subr.bf16.mxu0 %v1447_v18  ;;  %v316_v21 = vld [vmem:[%s1726_s21 + $0x48] sm:$0xff]  ;;  %v318_v23 = vld [vmem:[%s1726_s21 + $0x58] sm:$0xff]  ;;  %v317_v24 = vld [vmem:[%s1726_s21 + $0x50] sm:$0xff]  ;;  %p1542_p11 = scmp.ne.s32.totalorder %s2037_s24, %s1541_s13  ;;  %s1547_s20 = scalar_lea.vmem %s1546_s19, 1024 }
  0x1c   : > { %v320_v25 = vld [vmem:[%s1726_s21 + $0x68] sm:$0xff]  ;;  %v319_v26 = vld [vmem:[%s1726_s21 + $0x60] sm:$0xff]  ;;  %v322_v27 = vld [vmem:[%s1726_s21 + $0x78] sm:$0xff]  ;;  %p1548_p0 = scmp.lt.s32.totalorder %s2037_s24, %s1546_s19  ;;  %p1549_p1 = scmp.lt.s32.totalorder %s1547_s20, %s1541_s13 }
  0x1d   : > { %335 = vperm.xlu1 %1504, %v310_v12   ;;  %329 = vperm.xlu0 %1503, %v308_v13   ;;  %v321_v28 = vld [vmem:[%s1726_s21 + $0x70] sm:$0xff]  ;;  %p1543_p12 = pnand %p1542_p11, %p1694_p5 }
  0x1e   : > { %1450 = vmatpush3.bf16.msra.mxu0 %v1447_v18  ;;  %p1550_p2 = por %p1549_p1, %p1548_p0 }
  0x1f   : > { %p1544_p13 = pneg %p1543_p12 }
  0x21   : > { %341 = vperm.xlu1 %1504, %v312_v16   ;;  %338 = vperm.xlu0 %1503, %v311_v17   ;;  %p1551_p3 = pnand %p1550_p2, %p1544_p13 }
  0x25   : > { %347 = vperm.xlu1 %1504, %v314_v19   ;;  %344 = vperm.xlu0 %1503, %v313_v20  }
  0x29   : > { %353 = vperm.xlu1 %1504, %v316_v21   ;;  %350 = vperm.xlu0 %1503, %v315_v22  }
  0x2d   : > { %359 = vperm.xlu1 %1504, %v318_v23   ;;  %356 = vperm.xlu0 %1503, %v317_v24  }
  0x31   : > { %365 = vperm.xlu1 %1504, %v320_v25   ;;  %362 = vperm.xlu0 %1503, %v319_v26  }
  0x35   : > { %371 = vperm.xlu1 %1504, %v322_v27   ;;  %368 = vperm.xlu0 %1503, %v321_v28  }
  0x98   : > { %v333_v31 = vpop.permute.xlu1 %332  ;;  %v327_v32 = vpop.permute.xlu0 %326 }
  0x99   : > { %vm373_vm1 = vcmp.eq.s32.totalorder %v327_v32, %v1750_v30  ;;  %vm375_vm2 = vcmp.eq.s32.totalorder %v333_v31, %v1750_v30 }
  0x9a   : > { %v1258_v34 = vsel %vm373_vm1, 1.0, %v1606_v33  ;;  %v1260_v37 = vsel %vm375_vm2, 1.0, %v1606_v33  ;;  %vm623_vm2 = vcmask 261120  }
  0x9b   : > { %1371 = vmatprep.mubr.msk.f32.mxu0 %vm429_vm0, %v1258_v34 }
  0x9c   : > { %v336_v35 = vpop.permute.xlu1 %335  ;;  %v330_v36 = vpop.permute.xlu0 %329 }
  0x9d   : > { %vm374_vm3 = vcmp.eq.s32.totalorder %v330_v36, %v1750_v30  ;;  %vm376_vm4 = vcmp.eq.s32.totalorder %v336_v35, %v1750_v30 }
  0x9e   : > { %v1259_v38 = vsel %vm374_vm3, 1.0, %v1606_v33  ;;  %v1261_v41 = vsel %vm376_vm4, 1.0, %v1606_v33 }
  0x9f   : > { %1372 = vmatmul.mubr.msk.f32.vlgmr.msra.gmra.mrb[0].mxu0 %vm429_vm0, %v1259_v38 }
  0xa0   : > { %v342_v39 = vpop.permute.xlu1 %341  ;;  %1374 = vmatprep.mubr.msk.f32.mxu0 %vm429_vm0, %v1260_v37  ;;  %v339_v40 = vpop.permute.xlu0 %338 }
  0xa1   : > { %vm377_vm5 = vcmp.eq.s32.totalorder %v339_v40, %v1750_v30  ;;  %vm378_vm6 = vcmp.eq.s32.totalorder %v342_v39, %v1750_v30 }
  0xa2   : > { %v1262_v42 = vsel %vm377_vm5, 1.0, %v1606_v33  ;;  %v1263_v45 = vsel %vm378_vm6, 1.0, %v1606_v33 }
  0xa3   : > { %1375 = vmatmul.mubr.msk.f32.gmra.mrb[2].mxu0 %vm429_vm0, %v1261_v41 }
  0xa4   : > { %v348_v43 = vpop.permute.xlu1 %347  ;;  %1377 = vmatprep.mubr.msk.f32.mxu0 %vm429_vm0, %v1262_v42  ;;  %v345_v44 = vpop.permute.xlu0 %344 }
  0xa5   : > { %vm379_vm7 = vcmp.eq.s32.totalorder %v345_v44, %v1750_v30  ;;  %vm380_vm8 = vcmp.eq.s32.totalorder %v348_v43, %v1750_v30 }
  0xa6   : > { %v1264_v46 = vsel %vm379_vm7, 1.0, %v1606_v33  ;;  %v1265_v49 = vsel %vm380_vm8, 1.0, %v1606_v33 }
  0xa7   : > { %1378 = vmatmul.mubr.msk.f32.gmra.mrb[4].mxu0 %vm429_vm0, %v1263_v45 }
  0xa8   : > { %v354_v47 = vpop.permute.xlu1 %353  ;;  %1380 = vmatprep.mubr.msk.f32.mxu0 %vm429_vm0, %v1264_v46  ;;  %v351_v48 = vpop.permute.xlu0 %350 }
  0xa9   : > { %vm381_vm9 = vcmp.eq.s32.totalorder %v351_v48, %v1750_v30  ;;  %vm382_vm10 = vcmp.eq.s32.totalorder %v354_v47, %v1750_v30 }
  0xaa   : > { %v1266_v50 = vsel %vm381_vm9, 1.0, %v1606_v33  ;;  %v1267_v53 = vsel %vm382_vm10, 1.0, %v1606_v33 }
  0xab   : > { %1381 = vmatmul.mubr.msk.f32.gmra.mrb[6].mxu0 %vm429_vm0, %v1265_v49 }
  0xac   : > { %v360_v51 = vpop.permute.xlu1 %359  ;;  %1383 = vmatprep.mubr.msk.f32.mxu0 %vm429_vm0, %v1266_v50  ;;  %v357_v52 = vpop.permute.xlu0 %356 }
  0xad   : > { %vm383_vm11 = vcmp.eq.s32.totalorder %v357_v52, %v1750_v30  ;;  %vm384_vm12 = vcmp.eq.s32.totalorder %v360_v51, %v1750_v30 }
  0xae   : > { %v1268_v54 = vsel %vm383_vm11, 1.0, %v1606_v33  ;;  %v1269_v57 = vsel %vm384_vm12, 1.0, %v1606_v33 }
  0xaf   : > { %1384 = vmatmul.mubr.msk.f32.gmra.mrb[8].mxu0 %vm429_vm0, %v1267_v53 }
  0xb0   : > { %v366_v55 = vpop.permute.xlu1 %365  ;;  %1386 = vmatprep.mubr.msk.f32.mxu0 %vm429_vm0, %v1268_v54  ;;  %v363_v56 = vpop.permute.xlu0 %362 }
  0xb1   : > { %vm385_vm13 = vcmp.eq.s32.totalorder %v363_v56, %v1750_v30  ;;  %vm386_vm14 = vcmp.eq.s32.totalorder %v366_v55, %v1750_v30 }
  0xb2   : > { %v1270_v58 = vsel %vm385_vm13, 1.0, %v1606_v33  ;;  %v1271_v61 = vsel %vm386_vm14, 1.0, %v1606_v33 }
  0xb3   : > { %1387 = vmatmul.mubr.msk.f32.gmra.mrb[10].mxu0 %vm429_vm0, %v1269_v57 }
  0xb4   : > { %v372_v59 = vpop.permute.xlu1 %371  ;;  %1389 = vmatprep.mubr.msk.f32.mxu0 %vm429_vm0, %v1270_v58  ;;  %v369_v60 = vpop.permute.xlu0 %368 }
  0xb5   : > { %vm387_vm15 = vcmp.eq.s32.totalorder %v369_v60, %v1750_v30  ;;  %vm388_vm1 = vcmp.eq.s32.totalorder %v372_v59, %v1750_v30 }
  0xb6   : > { %v1272_v62 = vsel %vm387_vm15, 1.0, %v1606_v33  ;;  %v1273_v63 = vsel %vm388_vm1, 1.0, %v1606_v33 }
  0xb7   : > { %1390 = vmatmul.mubr.msk.f32.gmra.mrb[12].mxu0 %vm429_vm0, %v1271_v61 }
  0xb8   : > { %1392 = vmatprep.mubr.msk.f32.mxu0 %vm429_vm0, %v1272_v62 }
  0xbb   : > { %1393 = vmatmul.mubr.msk.f32.gmra.mrb[14].mxu0 %vm429_vm0, %v1273_v63 }
 0x172   : > { %v1373_v0 = vpop.f32.mrb[0].mxu0 }
 0x173   : > { %v544_v1 = vpop.f32.mrb[1].mxu0  ;;  %v627_v2 = vsel %vm623_vm2, %v1373_v0, 0.0 }
 0x174   : > { %628 = vadd.xlane.f32.xlu1 %v627_v2  ;;  %v624_v3 = vsel %vm623_vm2, %v544_v1, 0.0 }
 0x175   : > { %625 = vadd.xlane.f32.xlu0 %v624_v3 }
 0x176   : > { %v1786_v4 = vpop.f32.mrb[2].mxu0 }
 0x177   : > { %v554_v5 = vpop.f32.mrb[3].mxu0  ;;  %v633_v9 = vsel %vm623_vm2, %v1786_v4, 0.0 }
 0x178   : > { %v630_v6 = vsel %vm623_vm2, %v554_v5, 0.0 }
 0x179   : > { %631 = vadd.xlane.f32.xlu0 %v630_v6 }
 0x17a   : > { %v1789_v7 = vpop.f32.mrb[4].mxu0 }
 0x17b   : > { %v564_v8 = vpop.f32.mrb[5].mxu0  ;;  %v639_v13 = vsel %vm623_vm2, %v1789_v7, 0.0 }
 0x17c   : > { %v636_v10 = vsel %vm623_vm2, %v564_v8, 0.0 }
 0x17d   : > { %634 = vadd.xlane.f32.xlu0 %v633_v9  ;;  %637 = vadd.xlane.f32.xlu1 %v636_v10 }
 0x17e   : > { %v1794_v11 = vpop.f32.mrb[6].mxu0 }
 0x17f   : > { %v574_v12 = vpop.f32.mrb[7].mxu0  ;;  %v645_v17 = vsel %vm623_vm2, %v1794_v11, 0.0 }
 0x180   : > { %v642_v14 = vsel %vm623_vm2, %v574_v12, 0.0 }
 0x181   : > { %640 = vadd.xlane.f32.xlu0 %v639_v13  ;;  %643 = vadd.xlane.f32.xlu1 %v642_v14 }
 0x182   : > { %v1799_v15 = vpop.f32.mrb[8].mxu0 }
 0x183   : > { %v1801_v16 = vpop.f32.mrb[9].mxu0  ;;  %v651_v21 = vsel %vm623_vm2, %v1799_v15, 0.0 }
 0x184   : > { %v648_v18 = vsel %vm623_vm2, %v1801_v16, 0.0 }
 0x185   : > { %646 = vadd.xlane.f32.xlu0 %v645_v17  ;;  %649 = vadd.xlane.f32.xlu1 %v648_v18 }
 0x186   : > { %v1807_v19 = vpop.f32.mrb[10].mxu0 }
 0x187   : > { %v1809_v20 = vpop.f32.mrb[11].mxu0  ;;  %v657_v25 = vsel %vm623_vm2, %v1807_v19, 0.0 }
 0x188   : > { %v654_v22 = vsel %vm623_vm2, %v1809_v20, 0.0 }
 0x189   : > { %652 = vadd.xlane.f32.xlu0 %v651_v21  ;;  %655 = vadd.xlane.f32.xlu1 %v654_v22 }
 0x18a   : > { %v1815_v23 = vpop.f32.mrb[12].mxu0 }
 0x18b   : > { %v1817_v24 = vpop.f32.mrb[13].mxu0  ;;  %v663_v29 = vsel %vm623_vm2, %v1815_v23, 0.0 }
 0x18c   : > { %v660_v26 = vsel %vm623_vm2, %v1817_v24, 0.0 }
 0x18d   : > { %658 = vadd.xlane.f32.xlu0 %v657_v25  ;;  %661 = vadd.xlane.f32.xlu1 %v660_v26 }
 0x18e   : > { %v1823_v27 = vpop.f32.mrb[14].mxu0 }
 0x18f   : > { %v1825_v28 = vpop.f32.mrb[15].mxu0  ;;  %v669_v31 = vsel %vm623_vm2, %v1823_v27, 0.0 }
 0x190   : > { %v666_v30 = vsel %vm623_vm2, %v1825_v28, 0.0 }
 0x191   : > { %664 = vadd.xlane.f32.xlu0 %v663_v29  ;;  %667 = vadd.xlane.f32.xlu1 %v666_v30 }
 0x195   : > { %670 = vadd.xlane.f32.xlu0 %v669_v31 }
 0x201   : > { %v629_v32 = vpop.xlane.xlu1 %628 }
 0x202   : > { %v674_v33 = vmul.f32 0.03125, %v629_v32  ;;  %v626_v34 = vpop.xlane.xlu0 %625 }
 0x203   : > { %v673_v35 = vmul.f32 0.03125, %v626_v34 }
 0x204   : > { %v1833_v36 = vsub.f32 %v1373_v0, %v674_v33 }
 0x205   : > { %v1835_v37 = vsub.f32 %v544_v1, %v673_v35 }
 0x206   : > { %v632_v38 = vpop.xlane.xlu0 %631  ;;  %v706_v39 = vmul.f32 %v1833_v36, %v1833_v36 }
 0x207   : > { %v675_v40 = vmul.f32 0.03125, %v632_v38  ;;  %v705_v41 = vmul.f32 %v1835_v37, %v1835_v37 }
 0x208   : > { %v724_v42 = vsel %vm623_vm2, %v706_v39, 0.0 }
 0x209   : > { %v1842_v43 = vsub.f32 %v554_v5, %v675_v40  ;;  %725 = vadd.xlane.f32.xlu0 %v724_v42  ;;  %v721_v44 = vsel %vm623_vm2, %v705_v41, 0.0 }
 0x20a   : > { %v638_v45 = vpop.xlane.xlu1 %637  ;;  %722 = vadd.xlane.f32.xlu1 %v721_v44  ;;  %v635_v46 = vpop.xlane.xlu0 %634 }
 0x20b   : > { %v677_v47 = vmul.f32 0.03125, %v638_v45  ;;  %v676_v48 = vmul.f32 0.03125, %v635_v46  ;;  %v707_v49 = vmul.f32 %v1842_v43, %v1842_v43 }
 0x20d   : > { %v1847_v50 = vsub.f32 %v564_v8, %v677_v47  ;;  %v1850_v51 = vsub.f32 %v1786_v4, %v676_v48  ;;  %v727_v52 = vsel %vm623_vm2, %v707_v49, 0.0 }
 0x20e   : > { %v644_v53 = vpop.xlane.xlu1 %643  ;;  %728 = vadd.xlane.f32.xlu1 %v727_v52  ;;  %v641_v54 = vpop.xlane.xlu0 %640 }
 0x20f   : > { %v679_v55 = vmul.f32 0.03125, %v644_v53  ;;  %v678_v56 = vmul.f32 0.03125, %v641_v54  ;;  %v709_v57 = vmul.f32 %v1847_v50, %v1847_v50  ;;  %v708_v58 = vmul.f32 %v1850_v51, %v1850_v51  ;;  %v1505_v54 = vld [vmem:[%s2089_s4] sm:$0xff]  }
 0x210   : > { %1395 = vmatprep.subr.bf16.mxu1 %v1505_v54 }
 0x211   : > { %v1857_v59 = vsub.f32 %v574_v12, %v679_v55  ;;  %v1860_v60 = vsub.f32 %v1789_v7, %v678_v56  ;;  %v733_v61 = vsel %vm623_vm2, %v709_v57, 0.0  ;;  %v730_v62 = vsel %vm623_vm2, %v708_v58, 0.0  ;;  %1396 = vmatpush3.bf16.msra.mxu1 %v1505_v54  ;;  %v1059_v55 = vld [vmem:[%s2092_s7] sm:$0xff]  ;;  %v1061_v56 = vld [vmem:[%s2092_s7 + $0x10] sm:$0xff]  ;;  %v1062_v57 = vld [vmem:[%s2092_s7 + $0x18] sm:$0xff] }
 0x212   : > { %v650_v63 = vpop.xlane.xlu1 %649  ;;  %734 = vadd.xlane.f32.xlu1 %v733_v61  ;;  %731 = vadd.xlane.f32.xlu0 %v730_v62  ;;  %v647_v0 = vpop.xlane.xlu0 %646  ;;  %v1060_v58 = vld [vmem:[%s2092_s7 + $0x8] sm:$0xff] }
 0x213   : > { %v681_v1 = vmul.f32 0.03125, %v650_v63  ;;  %v680_v2 = vmul.f32 0.03125, %v647_v0  ;;  %v711_v3 = vmul.f32 %v1857_v59, %v1857_v59  ;;  %v710_v4 = vmul.f32 %v1860_v60, %v1860_v60 }
 0x215   : > { %v1869_v5 = vsub.f32 %v1801_v16, %v681_v1  ;;  %v1872_v6 = vsub.f32 %v1794_v11, %v680_v2  ;;  %v739_v7 = vsel %vm623_vm2, %v711_v3, 0.0  ;;  %v736_v8 = vsel %vm623_vm2, %v710_v4, 0.0 }
 0x216   : > { %v656_v9 = vpop.xlane.xlu1 %655  ;;  %740 = vadd.xlane.f32.xlu1 %v739_v7  ;;  %737 = vadd.xlane.f32.xlu0 %v736_v8  ;;  %v653_v10 = vpop.xlane.xlu0 %652 }
 0x217   : > { %v683_v12 = vmul.f32 0.03125, %v656_v9  ;;  %v682_v13 = vmul.f32 0.03125, %v653_v10  ;;  %v713_v14 = vmul.f32 %v1869_v5, %v1869_v5  ;;  %v712_v16 = vmul.f32 %v1872_v6, %v1872_v6 }
 0x219   : > { %v1881_v17 = vsub.f32 %v1809_v20, %v683_v12  ;;  %v1884_v11 = vsub.f32 %v1799_v15, %v682_v13  ;;  %v745_v18 = vsel %vm623_vm2, %v713_v14, 0.0  ;;  %v742_v21 = vsel %vm623_vm2, %v712_v16, 0.0 }
 0x21a   : > { %v662_v22 = vpop.xlane.xlu1 %661  ;;  %746 = vadd.xlane.f32.xlu1 %v745_v18  ;;  %743 = vadd.xlane.f32.xlu0 %v742_v21  ;;  %v659_v25 = vpop.xlane.xlu0 %658 }
 0x21b   : > { %v685_v26 = vmul.f32 0.03125, %v662_v22  ;;  %v684_v29 = vmul.f32 0.03125, %v659_v25  ;;  %v715_v30 = vmul.f32 %v1881_v17, %v1881_v17  ;;  %v714_v20 = vmul.f32 %v1884_v11, %v1884_v11 }
 0x21d   : > { %v1893_v31 = vsub.f32 %v1817_v24, %v685_v26  ;;  %v1896_v15 = vsub.f32 %v1807_v19, %v684_v29  ;;  %v751_v32 = vsel %vm623_vm2, %v715_v30, 0.0  ;;  %v748_v33 = vsel %vm623_vm2, %v714_v20, 0.0  ;;  %v1945_v26 = vld [vmem:[%s2087_s2] ss:$0 sm:$0xff] }
 0x21e   : > { %v668_v34 = vpop.xlane.xlu1 %667  ;;  %752 = vadd.xlane.f32.xlu1 %v751_v32  ;;  %749 = vadd.xlane.f32.xlu0 %v748_v33  ;;  %v665_v35 = vpop.xlane.xlu0 %664 }
 0x21f   : > { %v687_v38 = vmul.f32 0.03125, %v668_v34  ;;  %v686_v39 = vmul.f32 0.03125, %v665_v35  ;;  %v717_v40 = vmul.f32 %v1893_v31, %v1893_v31  ;;  %v716_v24 = vmul.f32 %v1896_v15, %v1896_v15 }
 0x221   : > { %v1905_v41 = vsub.f32 %v1825_v28, %v687_v38  ;;  %v1908_v19 = vsub.f32 %v1815_v23, %v686_v39  ;;  %v757_v42 = vsel %vm623_vm2, %v717_v40, 0.0  ;;  %v754_v44 = vsel %vm623_vm2, %v716_v24, 0.0  ;;  %v1952_v38 = vld [vmem:[%s2088_s3] ss:$0 sm:$0xff] }
 0x222   : > { %758 = vadd.xlane.f32.xlu1 %v757_v42  ;;  %755 = vadd.xlane.f32.xlu0 %v754_v44  ;;  %v671_v45 = vpop.xlane.xlu0 %670 }
 0x223   : > { %v688_v46 = vmul.f32 0.03125, %v671_v45  ;;  %v719_v47 = vmul.f32 %v1905_v41, %v1905_v41  ;;  %v718_v48 = vmul.f32 %v1908_v19, %v1908_v19 }
 0x225   : > { %v1917_v28 = vsub.f32 %v1823_v27, %v688_v46  ;;  %v763_v23 = vsel %vm623_vm2, %v719_v47, 0.0  ;;  %v760_v49 = vsel %vm623_vm2, %v718_v48, 0.0  ;;  %v1506_v27 = vld [vmem:[%s2089_s4 + $0x8] sm:$0xff]  }
 0x226   : > { %764 = vadd.xlane.f32.xlu1 %v763_v23  ;;  %761 = vadd.xlane.f32.xlu0 %v760_v49 }
 0x227   : > { %v720_v52 = vmul.f32 %v1917_v28, %v1917_v28  ;;  %1397 = vmatprep.subr.bf16.mxu1 %v1506_v27 }
 0x228   : > { %1398 = vmatpush3.bf16.msra.mxu1 %v1506_v27 }
 0x229   : > { %v766_v53 = vsel %vm623_vm2, %v720_v52, 0.0 }
 0x22a   : > { %767 = vadd.xlane.f32.xlu0 %v766_v53 }
 0x237   : > { %1065 = vperm.xlu1 %1504, %v1059_v55  }
 0x23b   : > { %1075 = vperm.xlu1 %1504, %v1061_v56  }
 0x23f   : > { %1080 = vperm.xlu1 %1504, %v1062_v57  }
 0x240   : > { %1070 = vperm.xlu0 %1503, %v1060_v58  }
 0x296   : > { %v726_v61 = vpop.xlane.xlu0 %725 }
 0x297   : > { %v770_v62 = vmul.f32 0.03125, %v726_v61  ;;  %v723_v63 = vpop.xlane.xlu1 %722 }
 0x298   : > { %v769_v0 = vmul.f32 0.03125, %v723_v63 }
 0x299   : > { %v786_v1 = vadd.f32 1e-05, %v770_v62 }
 0x29a   : > { %v785_v2 = vadd.f32 1e-05, %v769_v0 }
 0x29b   : > { %1509 = vrsqrt.f32 %v786_v1  ;;  %v729_v3 = vpop.xlane.xlu1 %728 }
 0x29c   : > { %1511 = vrsqrt.f32 %v785_v2  ;;  %v771_v4 = vmul.f32 0.03125, %v729_v3 }
 0x29e   : > { %v787_v7 = vadd.f32 1e-05, %v771_v4 }
 0x29f   : > { %v735_v8 = vpop.xlane.xlu1 %734  ;;  %v732_v9 = vpop.xlane.xlu0 %731 }
 0x2a0   : > { %1513 = vrsqrt.f32 %v787_v7  ;;  %v773_v10 = vmul.f32 0.03125, %v735_v8  ;;  %v772_v12 = vmul.f32 0.03125, %v732_v9 }
 0x2a2   : > { %v789_v13 = vadd.f32 1e-05, %v773_v10  ;;  %v788_v14 = vadd.f32 1e-05, %v772_v12 }
 0x2a3   : > { %v741_v16 = vpop.xlane.xlu1 %740  ;;  %v738_v18 = vpop.xlane.xlu0 %737 }
 0x2a4   : > { %1515 = vrsqrt.f32 %v789_v13  ;;  %v775_v21 = vmul.f32 0.03125, %v741_v16  ;;  %v774_v22 = vmul.f32 0.03125, %v738_v18 }
 0x2a5   : > { %v1510_v25 = vpop.eup %1509  ;;  %1517 = vrsqrt.f32 %v788_v14 }
 0x2a6   : > { %v1512_v29 = vpop.eup %1511  ;;  %v791_v30 = vadd.f32 1e-05, %v775_v21  ;;  %v790_v20 = vadd.f32 1e-05, %v774_v22  ;;  %v818_v32 = vmul.f32 %v1510_v25, %v1833_v36 }
 0x2a7   : > { %v747_v33 = vpop.xlane.xlu1 %746  ;;  %v744_v34 = vpop.xlane.xlu0 %743  ;;  %v817_v35 = vmul.f32 %v1512_v29, %v1835_v37 }
 0x2a8   : > { %1519 = vrsqrt.f32 %v791_v30  ;;  %v777_v39 = vmul.f32 0.03125, %v747_v33  ;;  %v776_v40 = vmul.f32 0.03125, %v744_v34  ;;  %v841_v24 = vmul.f32 %v1945_v26, %v818_v32 }
 0x2a9   : > { %1521 = vrsqrt.f32 %v790_v20  ;;  %v840_v42 = vmul.f32 %v1945_v26, %v817_v35 }
 0x2aa   : > { %v1514_v44 = vpop.eup %1513  ;;  %v793_v45 = vadd.f32 1e-05, %v777_v39  ;;  %v792_v36 = vadd.f32 1e-05, %v776_v40  ;;  %v864_v46 = vadd.f32 %v1952_v38, %v841_v24 }
 0x2ab   : > { %v753_v47 = vpop.xlane.xlu1 %752  ;;  %v750_v37 = vpop.xlane.xlu0 %749  ;;  %v863_v48 = vadd.f32 %v1952_v38, %v840_v42  ;;  %v819_v52 = vmul.f32 %v1514_v44, %v1842_v43 }
 0x2ac   : > { %1523 = vrsqrt.f32 %v793_v45  ;;  %v779_v23 = vmul.f32 0.03125, %v753_v47  ;;  %v778_v49 = vmul.f32 0.03125, %v750_v37 }
 0x2ad   : > { %1525 = vrsqrt.f32 %v792_v36  ;;  %v884_v53 = vpack.c.bf16 %v864_v46, %v863_v48  ;;  %v842_v43 = vmul.f32 %v1945_v26, %v819_v52 }
 0x2ae   : > { %v1516_v54 = vpop.eup %1515  ;;  %v795_v27 = vadd.f32 1e-05, %v779_v23  ;;  %v794_v55 = vadd.f32 1e-05, %v778_v49 }
 0x2af   : > { %v1518_v56 = vpop.eup %1517  ;;  %v821_v57 = vmul.f32 %v1516_v54, %v1847_v50  ;;  %v759_v58 = vpop.xlane.xlu1 %758  ;;  %1399 = vmatprep.mubr.msk.bf16.mxu1 %vm623_vm2, %v884_v53  ;;  %v865_v14 = vadd.f32 %v1952_v38, %v842_v43 }
 0x2b0   : > { %v756_v61 = vpop.xlane.xlu0 %755  ;;  %v820_v62 = vmul.f32 %v1518_v56, %v1850_v51  ;;  %1527 = vrsqrt.f32 %v795_v27  ;;  %v781_v63 = vmul.f32 0.03125, %v759_v58 }
 0x2b1   : > { %v780_v0 = vmul.f32 0.03125, %v756_v61  ;;  %1529 = vrsqrt.f32 %v794_v55  ;;  %v844_v10 = vmul.f32 %v1945_v26, %v821_v57 }
 0x2b2   : > { %v1520_v1 = vpop.eup %1519  ;;  %v797_v2 = vadd.f32 1e-05, %v781_v63  ;;  %v843_v4 = vmul.f32 %v1945_v26, %v820_v62 }
 0x2b3   : > { %v796_v3 = vadd.f32 1e-05, %v780_v0  ;;  %v1522_v7 = vpop.eup %1521  ;;  %v823_v50 = vmul.f32 %v1520_v1, %v1857_v59  ;;  %v765_v8 = vpop.xlane.xlu1 %764 }
 0x2b4   : > { %v762_v9 = vpop.xlane.xlu0 %761  ;;  %v822_v51 = vmul.f32 %v1522_v7, %v1860_v60  ;;  %1531 = vrsqrt.f32 %v797_v2  ;;  %v783_v12 = vmul.f32 0.03125, %v765_v8  ;;  %v866_v16 = vadd.f32 %v1952_v38, %v843_v4 }
 0x2b5   : > { %v782_v13 = vmul.f32 0.03125, %v762_v9  ;;  %1533 = vrsqrt.f32 %v796_v3  ;;  %v867_v60 = vadd.f32 %v1952_v38, %v844_v10  ;;  %v846_v32 = vmul.f32 %v1945_v26, %v823_v50 }
 0x2b6   : > { %v1524_v18 = vpop.eup %1523  ;;  %v799_v21 = vadd.f32 1e-05, %v783_v12  ;;  %v845_v25 = vmul.f32 %v1945_v26, %v822_v51  ;;  %v885_v30 = vpack.c.bf16 %v866_v16, %v865_v14 }
 0x2b7   : > { %v798_v22 = vadd.f32 1e-05, %v782_v13  ;;  %v1526_v59 = vpop.eup %1525  ;;  %v825_v29 = vmul.f32 %v1524_v18, %v1869_v5  ;;  %v869_v44 = vadd.f32 %v1952_v38, %v846_v32 }
 0x2b8   : > { %v768_v20 = vpop.xlane.xlu0 %767  ;;  %v824_v33 = vmul.f32 %v1526_v59, %v1872_v6  ;;  %1535 = vrsqrt.f32 %v799_v21  ;;  %v868_v35 = vadd.f32 %v1952_v38, %v845_v25  ;;  %1400 = vmatmul.mubr.msk.bf16.vlgmr.msra.gmra.mrb[0].mxu1 %vm623_vm2, %v885_v30 }
 0x2b9   : > { %v784_v34 = vmul.f32 0.03125, %v768_v20  ;;  %1537 = vrsqrt.f32 %v798_v22  ;;  %v848_v45 = vmul.f32 %v1945_v26, %v825_v29 }
 0x2ba   : > { %v1528_v39 = vpop.eup %1527  ;;  %v886_v24 = vpack.c.bf16 %v868_v35, %v867_v60  ;;  %v847_v5 = vmul.f32 %v1945_v26, %v824_v33 }
 0x2bb   : > { %v800_v40 = vadd.f32 1e-05, %v784_v34  ;;  %v1530_v42 = vpop.eup %1529  ;;  %v827_v36 = vmul.f32 %v1528_v39, %v1881_v17  ;;  %v871_v49 = vadd.f32 %v1952_v38, %v848_v45 }
 0x2bc   : > { %v826_v6 = vmul.f32 %v1530_v42, %v1884_v11  ;;  %1403 = vmatprep.mubr.msk.bf16.mxu1 %vm623_vm2, %v886_v24  ;;  %v870_v46 = vadd.f32 %v1952_v38, %v847_v5 }
 0x2bd   : > { %1539 = vrsqrt.f32 %v800_v40  ;;  %v850_v11 = vmul.f32 %v1945_v26, %v827_v36 }
 0x2be   : > { %v1532_v47 = vpop.eup %1531  ;;  %v887_v37 = vpack.c.bf16 %v870_v46, %v869_v44  ;;  %v849_v48 = vmul.f32 %v1945_v26, %v826_v6 }
 0x2bf   : > { %v1534_v23 = vpop.eup %1533  ;;  %v829_v52 = vmul.f32 %v1532_v47, %v1893_v31  ;;  %v873_v31 = vadd.f32 %v1952_v38, %v850_v11 }
 0x2c0   : > { %v828_v53 = vmul.f32 %v1534_v23, %v1896_v15  ;;  %v872_v17 = vadd.f32 %v1952_v38, %v849_v48  ;;  %1404 = vmatmul.mubr.msk.bf16.gmra.mrb[4].mxu1 %vm623_vm2, %v887_v37 }
 0x2c1   : > { %v852_v61 = vmul.f32 %v1945_v26, %v829_v52 }
 0x2c2   : > { %v1536_v54 = vpop.eup %1535  ;;  %v888_v27 = vpack.c.bf16 %v872_v17, %v871_v49  ;;  %v851_v55 = vmul.f32 %v1945_v26, %v828_v53 }
 0x2c3   : > { %v1538_v56 = vpop.eup %1537  ;;  %v831_v57 = vmul.f32 %v1536_v54, %v1905_v41  ;;  %v875_v41 = vadd.f32 %v1952_v38, %v852_v61 }
 0x2c4   : > { %v830_v58 = vmul.f32 %v1538_v56, %v1908_v19  ;;  %1407 = vmatprep.mubr.msk.bf16.mxu1 %vm623_vm2, %v888_v27  ;;  %v874_v15 = vadd.f32 %v1952_v38, %v851_v55 }
 0x2c5   : > { %v854_v1 = vmul.f32 %v1945_v26, %v831_v57 }
 0x2c6   : > { %v889_v63 = vpack.c.bf16 %v874_v15, %v873_v31  ;;  %v853_v0 = vmul.f32 %v1945_v26, %v830_v58 }
 0x2c7   : > { %v1540_v62 = vpop.eup %1539  ;;  %v877_v4 = vadd.f32 %v1952_v38, %v854_v1 }
 0x2c8   : > { %v832_v43 = vmul.f32 %v1540_v62, %v1917_v28  ;;  %v876_v19 = vadd.f32 %v1952_v38, %v853_v0  ;;  %1408 = vmatmul.mubr.msk.bf16.gmra.mrb[8].mxu1 %vm623_vm2, %v889_v63  ;;  %v1507_v28 = vld [vmem:[%s2091_s6] sm:$0xff]  }
 0x2ca   : > { %v855_v2 = vmul.f32 %v1945_v26, %v832_v43  ;;  %v890_v3 = vpack.c.bf16 %v876_v19, %v875_v41  ;;  %v1292_v26 = vld [vmem:[%s2090_s5] ss:$0 sm:$0xff] }
 0x2cc   : > { %v878_v7 = vadd.f32 %v1952_v38, %v855_v2  ;;  %1411 = vmatprep.mubr.msk.bf16.mxu1 %vm623_vm2, %v890_v3 }
 0x2ce   : > { %v891_v50 = vpack.c.bf16 %v878_v7, %v877_v4 }
 0x2d0   : > { %1412 = vmatmul.mubr.msk.bf16.gmra.mrb[12].mxu1 %vm623_vm2, %v891_v50 }
 0x2d1   : > { %1431 = vmatprep.mubr.msk.bf16.mxu1 %vm429_vm0, %v1507_v28 }
 0x38b   : > { %v1401_v8 = vpop.f32.mrb[0].mxu1 }
 0x38c   : > { %v977_v9 = vadd.f32 %v1401_v8, %v1292_v26  ;;  %v968_v10 = vpop.f32.mrb[1].mxu1  ;;  %v1508_v8 = vld [vmem:[%s2091_s6 + $0x8] sm:$0xff]  }
 0x38d   : > { %v969_v51 = vadd.f32 %v1292_v26, %v968_v10  ;;  %v1402_v38 = vpop.f32.mrb[2].mxu1 }
 0x38e   : > { %v980_v12 = vadd.f32 %v1402_v38, %v1292_v26  ;;  %v971_v13 = vpop.f32.mrb[3].mxu1  ;;  %v1033_v16 = vmax.f32 %v977_v9, 0.0  ;;  %v1066_v9 = vpop.permute.xlu1 %1065 }
 0x38f   : > { %v972_v14 = vadd.f32 %v1292_v26, %v971_v13  ;;  %v1031_v21 = vmax.f32 %v969_v51, 0.0 }
 0x390   : > { %v1034_v18 = vmax.f32 %v980_v12, 0.0 }
 0x391   : > { %v1032_v22 = vmax.f32 %v972_v14, 0.0 }
 0x392   : > { %v1048_v25 = vpack.c.bf16 %v1034_v18, %v1033_v16  ;;  %v1076_v10 = vpop.permute.xlu1 %1075  ;;  %v1071_v18 = vpop.permute.xlu0 %1070 }
 0x393   : > { %v1047_v59 = vpack.c.bf16 %v1032_v22, %v1031_v21  ;;  %v1405_v29 = vpop.f32.mrb[4].mxu1 }
 0x394   : > { %v993_v30 = vadd.f32 %v1405_v29, %v1292_v26  ;;  %v984_v20 = vpop.f32.mrb[5].mxu1  ;;  %v1103_v48 = vsel %vm429_vm0, %v1048_v25, 0 }
 0x395   : > { %v985_v60 = vadd.f32 %v1292_v26, %v984_v20  ;;  %v1406_v32 = vpop.f32.mrb[6].mxu1  ;;  %1451 = vmatprep.subr.msk.bf16.mxu1 %vm429_vm0, %v1047_v59  ;;  %v1100_v33 = vsel %vm429_vm0, %v1047_v59, 0 }
 0x396   : > { %v996_v34 = vadd.f32 %v1406_v32, %v1292_v26  ;;  %v987_v35 = vpop.f32.mrb[7].mxu1  ;;  %1416 = vmatpush3.bf16.xpose.msra.mxu1 %v1100_v33  ;;  %v1037_v40 = vmax.f32 %v993_v30, 0.0  ;;  %v1081_v13 = vpop.permute.xlu1 %1080 }
 0x397   : > { %v988_v39 = vadd.f32 %v1292_v26, %v987_v35  ;;  %1452 = vmatprep.subr.msk.bf16.mxu1 %vm429_vm0, %v1048_v25  ;;  %v1035_v5 = vmax.f32 %v985_v60, 0.0 }
 0x398   : > { %v1038_v24 = vmax.f32 %v996_v34, 0.0 }
 0x399   : > { %v1036_v42 = vmax.f32 %v988_v39, 0.0 }
 0x39a   : > { %v1050_v44 = vpack.c.bf16 %v1038_v24, %v1037_v40 }
 0x39b   : > { %v1049_v45 = vpack.c.bf16 %v1036_v42, %v1035_v5  ;;  %v1409_v36 = vpop.f32.mrb[8].mxu1 }
 0x39c   : > { %v1009_v6 = vadd.f32 %v1409_v36, %v1292_v26  ;;  %v1000_v46 = vpop.f32.mrb[9].mxu1  ;;  %v1109_v4 = vsel %vm429_vm0, %v1050_v44, 0 }
 0x39d   : > { %v1001_v47 = vadd.f32 %v1292_v26, %v1000_v46  ;;  %v1410_v37 = vpop.f32.mrb[10].mxu1  ;;  %v1106_v61 = vsel %vm429_vm0, %v1049_v45, 0 }
 0x39e   : > { %v1012_v23 = vadd.f32 %v1410_v37, %v1292_v26  ;;  %v1003_v49 = vpop.f32.mrb[11].mxu1  ;;  %1418 = vmatpush3.bf16.xpose.msra.mxu1 %v1103_v48  ;;  %v1041_v53 = vmax.f32 %v1009_v6, 0.0 }
 0x39f   : > { %v1004_v52 = vadd.f32 %v1292_v26, %v1003_v49  ;;  %1453 = vmatprep.subr.msk.bf16.mxu1 %vm429_vm0, %v1049_v45  ;;  %v1039_v11 = vmax.f32 %v1001_v47, 0.0 }
 0x3a0   : > { %v1042_v17 = vmax.f32 %v1012_v23, 0.0 }
 0x3a1   : > { %v1040_v54 = vmax.f32 %v1004_v52, 0.0 }
 0x3a2   : > { %v1052_v27 = vpack.c.bf16 %v1042_v17, %v1041_v53 }
 0x3a3   : > { %v1051_v55 = vpack.c.bf16 %v1040_v54, %v1039_v11  ;;  %v1413_v56 = vpop.f32.mrb[12].mxu1 }
 0x3a4   : > { %v1025_v57 = vadd.f32 %v1413_v56, %v1292_v26  ;;  %v1016_v58 = vpop.f32.mrb[13].mxu1  ;;  %v1115_v50 = vsel %vm429_vm0, %v1052_v27, 0 }
 0x3a5   : > { %v1017_v31 = vadd.f32 %v1292_v26, %v1016_v58  ;;  %v1414_v15 = vpop.f32.mrb[14].mxu1  ;;  %v1112_v7 = vsel %vm429_vm0, %v1051_v55, 0 }
 0x3a6   : > { %v1028_v62 = vadd.f32 %v1414_v15, %v1292_v26  ;;  %v1019_v63 = vpop.f32.mrb[15].mxu1  ;;  %1420 = vmatpush3.bf16.xpose.msra.mxu1 %v1106_v61  ;;  %v1045_v43 = vmax.f32 %v1025_v57, 0.0 }
 0x3a7   : > { %v1020_v0 = vadd.f32 %v1292_v26, %v1019_v63  ;;  %1454 = vmatprep.subr.msk.bf16.mxu1 %vm429_vm0, %v1050_v44  ;;  %v1043_v41 = vmax.f32 %v1017_v31, 0.0 }
 0x3a8   : > { %v1046_v1 = vmax.f32 %v1028_v62, 0.0 }
 0x3a9   : > { %v1044_v19 = vmax.f32 %v1020_v0, 0.0 }
 0x3aa   : > { %v1054_v2 = vpack.c.bf16 %v1046_v1, %v1045_v43 }
 0x3ab   : > { %v1053_v3 = vpack.c.bf16 %v1044_v19, %v1043_v41 }
 0x3ac   : > { %v1121_v26 = vsel %vm429_vm0, %v1054_v2, 0 }
 0x3ad   : > { %v1118_v28 = vsel %vm429_vm0, %v1053_v3, 0 }
 0x3ae   : > { %1422 = vmatpush3.bf16.xpose.msra.mxu1 %v1109_v4 }
 0x3af   : > { %1455 = vmatprep.subr.msk.bf16.mxu1 %vm429_vm0, %v1051_v55 }
 0x3b6   : > { %1424 = vmatpush3.bf16.xpose.msra.mxu1 %v1112_v7 }
 0x3b7   : > { %1456 = vmatprep.subr.msk.bf16.mxu1 %vm429_vm0, %v1052_v27 }
 0x3be   : > { %1426 = vmatpush3.bf16.xpose.msra.mxu1 %v1115_v50 }
 0x3bf   : > { %1457 = vmatprep.subr.msk.bf16.mxu1 %vm429_vm0, %v1053_v3 }
 0x3c6   : > { %1428 = vmatpush3.bf16.xpose.msra.mxu1 %v1118_v28 }
 0x3c7   : > { %1458 = vmatprep.subr.msk.bf16.mxu1 %vm429_vm0, %v1054_v2 }
 0x3ce   : > { %1430 = vmatpush3.bf16.xpose.msra.mxu1 %v1121_v26 }
 0x3d5   : > { %1432 = vmatmul.mubr.msk.bf16.vlgmr.msra.gmra.mrb[16].mxu1 %vm429_vm0, %v1508_v8 }
 0x4a8   : > { %v1433_v51 = vpop.f32.mrb[16].mxu1 }
 0x4a9   : > { %v1166_v38 = vadd.f32 %v1433_v51, %v1076_v10  ;;  %v1157_v12 = vpop.f32.mrb[17].mxu1 }
 0x4aa   : > { %v1158_v14 = vadd.f32 %v1157_v12, %v1066_v9  ;;  %v1434_v16 = vpop.f32.mrb[18].mxu1 }
 0x4ab   : > { %1174 = vst [vmem:[%s299_s23 + $0x10] sm:$0xff] %v1166_v38  ;;  %v1169_v21 = vadd.f32 %v1434_v16, %v1081_v13  ;;  %v1160_v22 = vpop.f32.mrb[19].mxu1 }
 0x4ac   : > { %1172 = vst [vmem:[%s299_s23] sm:$0xff] %v1158_v14  ;;  %v1161_v25 = vadd.f32 %v1160_v22, %v1071_v18 }
 0x4ad   : > { %1175 = vst [vmem:[%s299_s23 + $0x18] sm:$0xff] %v1169_v21 }
 0x4ae   : > { %1173 = vst [vmem:[%s299_s23 + $0x8] sm:$0xff] %v1161_v25 }
 0x4af   : > { %1554 = shalt.err (!%p1551_p3)
}
 0x4b0   : > { %s1555_s21 = scalar_lea.hbm %s2042_s12, 512  ;;  %s1559_s23 = scalar_lea.hbm %s2093_s8, 1024 }
 0x4b1   : > { %p1556_p4 = scmp.ne.s32.totalorder %s2042_s12, %s1555_s21  ;;  %p1560_p9 = scmp.lt.u32.totalorder %s2042_s12, %s2093_s8 }
 0x4b2   : > { %p1561_p10 = scmp.lt.u32.totalorder %s1559_s23, %s1555_s21  ;;  %p1563_p12 = scmp.lt.u32.totalorder %s1555_s21, %s2042_s12 }
 0x4b3   : > { %p1557_p7 = pnand %p1556_p4, %p1694_p5 }
 0x4b4   : > { %p1562_p11 = por %p1561_p10, %p1560_p9 }
 0x4b5   : > { %p1558_p8 = pneg %p1557_p7 }
 0x4b6   : > { %p1564_p13 = por %p1563_p12, %p1562_p11 }
 0x4b8   : > { %p1565_p0 = pnand %p1564_p13, %p1558_p8 }
 0x4ba   : > { %1568 = shalt.err (!%p1565_p0)
}
 0x4bb   : > { %s1608_s10 = smov 128   ;;  %s1609_s13 = smov 256  }
 0x4bc   : > { %s1610_s18 = smov 8  }
 0x4bd   : > { %1459 = dma.vmem_to_hbm [thread:$0]  (%p1694_p5), %s2037_s24, 512, %s2042_s12, %s2044_s9, %s1608_s10, %s1609_s13, %s1610_s18  }
 0x4be PF: > { %p1465_p1 = scmp.ge.s32.totalorder %s1603_s30, 2  ;;  %s1204_s19 = sand.u32 1, %s1591_s27  }
 0x4bf   : > { %s1205_s20 = scalar_lea.sflag [#allocation3], %s1204_s19 }
 0x4c0   : > { %p1462_p2 = pnand %p1465_p1, %p1698_p6 }
 0x4c2   : > { %1586 = dma.done.wait (!%p1462_p2), %s1205_s20, 512  }
 0x4c3   : > { %1588 = vsyncadd (!%p1462_p2), %s1205_s20, 4294966784  ;;  %p18_p3 = scmp.ge.s32.totalorder %s1681_s11, 4   ;;  %s2096_s27 = smov %s1595_s28 }
 0x4c4   : > { %s2097_s28 = smov %s1599_s29  ;;  %s2098_s29 = smov %s1692_s14 }
 0x4c5   : > { %s2099_s30 = smov %s1681_s11  ;;  %20 = sbr.rel (!%p18_p3) target bundleno = 3 (0x3), region = 87 }
 0x4cc   :  { %1210 = vsyncpa [#allocation3], 1 }
 0x4cd   :  { %1212 = vsyncpa [#allocation3 + $0x1], 1 }

</bundles_post_ra>
